<compile_context>
chip_gen: v7x
topology: tpu7x:2x2x1
jax: 0.10.0
libtpu: 0.0.40
codegen_flags: <defaults>
</compile_context>

<pallas_src>
import dataclasses
import functools
import math

import jax
import jax.numpy as jnp
from jax.experimental import pallas as pl
from jax.experimental.pallas import tpu as pltpu


def _round_up(v, m):
    return ((v + m - 1) // m) * m


# ---------------------------------------------------------------------------
# Kernel: out = softmax(x @ W_T + b) over the (lane-padded) class axis.
# ---------------------------------------------------------------------------
def linear_softmax_kernel(x_ref, w_ref, b_ref, o_ref, *, use_mxu):
    x = x_ref[...]                      # (tb, d_eff)
    b = b_ref[...]                      # (1, c_pad)

    if use_mxu:
        # Pre-transposed weight -> feed the MXU directly, f32 accumulation.
        logits = jnp.dot(x, w_ref[...], preferred_element_type=jnp.float32) + b
    else:
        # Degenerate contraction (D <= 4): a handful of VPU broadcast-FMAs is
        # cheaper than an MXU push/pop.
        w = w_ref[...]
        acc = x[:, 0:1] * w[0:1, :]
        for d in range(1, x.shape[1]):
            acc = acc + x[:, d:d + 1] * w[d:d + 1, :]
        logits = acc + b

    # Numerically stable softmax over the lane-dense padded class axis.
    # Padded lanes carry a -1e30 bias, so exp() underflows to exactly 0 and
    # they contribute nothing to the denominator.
    m = jnp.max(logits, axis=-1, keepdims=True)
    e = jnp.exp(logits - m)
    denom = jnp.sum(e, axis=-1, keepdims=True)
    # Exact reciprocal: denom is only a (tb, 1) column, so exactness is free
    # relative to the (tb, c_pad) multiply, and rows sum to ~1 exactly.
    o_ref[...] = (e * pl.reciprocal(denom, approx=False)).astype(o_ref.dtype)


# ---------------------------------------------------------------------------
# Parameter preparation (hoisted out of the per-call path).
# ---------------------------------------------------------------------------
@dataclasses.dataclass(frozen=True)
class PreparedLinear:
    w_t: jax.Array        # (d_eff, c_pad) transposed, zero-padded weight
    b_p: jax.Array        # (1, c_pad) bias; padded lanes = -1e30
    in_features: int
    num_classes: int
    d_eff: int
    c_pad: int
    use_mxu: bool


def prepare_params(weight, bias):
    """weight: (C, D) PyTorch nn.Linear layout, bias: (C,).  Call once."""
    C, D = weight.shape
    use_mxu = D > 4                               # VPU fallback only for tiny D
    d_eff = _round_up(D, 8) if use_mxu else D     # sublane/MXU granule for K
    c_pad = max(128, _round_up(C, 128))           # lane-dense class axis

    w_t = jnp.zeros((d_eff, c_pad), jnp.float32)
    w_t = w_t.at[:D, :C].set(weight.T.astype(jnp.float32))
    b_p = jnp.full((1, c_pad), -1e30, jnp.float32)
    b_p = b_p.at[0, :C].set(bias.astype(jnp.float32))
    return PreparedLinear(w_t, b_p, D, C, d_eff, c_pad, use_mxu)


# ---------------------------------------------------------------------------
# Forward pass.
# ---------------------------------------------------------------------------
def _choose_batch_tile(B, d_eff, c_pad, batch_tile, vmem_budget):
    stationary = (d_eff * c_pad + c_pad) * 4      # single-buffered w + b
    per_row = 2 * (d_eff + c_pad) * 4             # double-buffered x + out rows
    tb_cap = max(8, (vmem_budget - stationary) // per_row)
    tb = min(batch_tile, tb_cap, _round_up(B, 8))
    tb = max(8, (tb // 8) * 8)
    # Megacore (v7x): give the "parallel" batch axis >= 2 programs when possible.
    if B >= 16 and pl.cdiv(B, tb) < 2:
        tb = max(8, _round_up(pl.cdiv(B, 2), 8))
    return tb


def model_forward(x, params: PreparedLinear, *, batch_tile=1024,
                  out_dtype=jnp.float32):
    """softmax(x @ weight.T + bias) over the class axis; x: (B, D) f32."""
    B, D = x.shape
    assert D == params.in_features

    # Pad the contraction dim only when the MXU path needs an aligned K
    # (no extra HBM copy of x in the common D % 8 == 0 / tiny-D cases).
    if params.d_eff != D:
        x = jnp.pad(x, ((0, 0), (0, params.d_eff - D)))

    # ~28 MiB budget for resident tiles: conservative w.r.t. v7x's 64 MiB
    # physical VMEM per TensorCore and v5e's small default scoped VMEM.
    vmem_budget = 28 * 1024 * 1024
    tb = _choose_batch_tile(B, params.d_eff, params.c_pad, batch_tile, vmem_budget)
    grid = (pl.cdiv(B, tb),)   # no batch padding: partial last block's
                               # out-of-bounds rows are masked on store

    vmem_need = ((params.d_eff * params.c_pad + params.c_pad) * 4
                 + 2 * tb * (params.d_eff + params.c_pad) * 4)
    vmem_limit = int(min(48 * 1024 * 1024,
                         max(32 * 1024 * 1024, vmem_need + (4 << 20))))

    # Stationary operands (constant index_map): single-buffered; x / out keep
    # the default double-buffering for the pipeline.
    stationary = dict(pipeline_mode=pl.Buffered(1))

    out = pl.pallas_call(
        functools.partial(linear_softmax_kernel, use_mxu=params.use_mxu),
        out_shape=jax.ShapeDtypeStruct((B, params.c_pad), out_dtype),
        grid=grid,
        in_specs=[
            pl.BlockSpec((tb, params.d_eff), lambda i: (i, 0)),                     # x
            pl.BlockSpec((params.d_eff, params.c_pad), lambda i: (0, 0), **stationary),  # W^T
            pl.BlockSpec((1, params.c_pad), lambda i: (0, 0), **stationary),        # bias
        ],
        out_specs=pl.BlockSpec((tb, params.c_pad), lambda i: (i, 0)),
        compiler_params=pltpu.CompilerParams(
            dimension_semantics=("parallel",),
            vmem_limit_bytes=vmem_limit),
    )(x, params.w_t, params.b_p)

    # TODO(synk): for very large class counts, tile the class axis with an
    # online/two-pass softmax instead of holding a (tb, c_pad) output block.
    return out[:, :params.num_classes]


if __name__ == "__main__":
    # ch07 LinearMultipleClassification: input_size=2 features, class_num=3.
    batch, input_size, class_num = 8, 2, 3

    key = jax.random.PRNGKey(0)
    kx, kw, kb = jax.random.split(key, 3)

    # Deterministic params mimicking nn.Linear default init bounds.
    bound = 1.0 / math.sqrt(input_size)
    weight = jax.random.uniform(kw, (class_num, input_size), jnp.float32,
                                minval=-bound, maxval=bound)
    bias = jax.random.uniform(kb, (class_num,), jnp.float32,
                              minval=-bound, maxval=bound)
    x = jax.random.normal(kx, (batch, input_size), jnp.float32)

    params = prepare_params(weight, bias)          # hoisted layout plumbing
    out = jax.block_until_ready(model_forward(x, params))

    # Reference in plain JAX (F.softmax on 2-D input defaults to the class axis).
    ref = jax.nn.softmax(x @ weight.T + bias, axis=-1)
    assert out.shape == (batch, class_num)
    assert jnp.allclose(out, ref, atol=1e-4, rtol=1e-4), "mismatch vs reference"
    assert jnp.allclose(jnp.sum(out, axis=-1), 1.0, atol=1e-4), "rows must sum to ~1"

    print("KERNEL_OK")
</pallas_src>

<mosaic_0001>
module attributes {stable_mosaic.version = 11 : i64} {
  func.func @linear_softmax_kernel(%arg0: i32, %arg1: memref<8x2xf32, #tpu.memory_space<vmem>>, %arg2: memref<2x128xf32, #tpu.memory_space<vmem>>, %arg3: memref<1x128xf32, #tpu.memory_space<vmem>>, %arg4: memref<8x128xf32, #tpu.memory_space<vmem>>) attributes {dimension_semantics = [#tpu.dimension_semantics<parallel>], iteration_bounds = array<i64: 1>, scalar_prefetch = 0 : i64, scratch_operands = 0 : i64, tpu.core_type = #tpu.core_type<tc>, window_params = [{transform_indices = @transform_0, window_bounds = array<i64: 8, 2>}, {pipeline_mode = #tpu.pipeline_mode<synchronous>, transform_indices = @transform_1, window_bounds = array<i64: 2, 128>}, {pipeline_mode = #tpu.pipeline_mode<synchronous>, transform_indices = @transform_2, window_bounds = array<i64: 1, 128>}, {transform_indices = @transform_3, window_bounds = array<i64: 8, 128>}]} {
    %c0 = arith.constant 0 : index
    %c0_0 = arith.constant 0 : index
    %0 = vector.load %arg1[%c0, %c0_0] : memref<8x2xf32, #tpu.memory_space<vmem>>, vector<8x2xf32>
    %c0_1 = arith.constant 0 : index
    %c0_2 = arith.constant 0 : index
    %1 = vector.load %arg3[%c0_1, %c0_2] : memref<1x128xf32, #tpu.memory_space<vmem>>, vector<1x128xf32>
    %c0_3 = arith.constant 0 : index
    %c0_4 = arith.constant 0 : index
    %2 = vector.load %arg2[%c0_3, %c0_4] : memref<2x128xf32, #tpu.memory_space<vmem>>, vector<2x128xf32>
    %3 = vector.extract_strided_slice %0 {offsets = [0, 0], sizes = [8, 1], strides = [1, 1]} : vector<8x2xf32> to vector<8x1xf32>
    %4 = vector.extract_strided_slice %2 {offsets = [0, 0], sizes = [1, 128], strides = [1, 1]} : vector<2x128xf32> to vector<1x128xf32>
    %5 = vector.broadcast %3 : vector<8x1xf32> to vector<8x128xf32>
    %6 = vector.broadcast %4 : vector<1x128xf32> to vector<8x128xf32>
    %7 = arith.mulf %5, %6 : vector<8x128xf32>
    %8 = vector.extract_strided_slice %0 {offsets = [0, 1], sizes = [8, 1], strides = [1, 1]} : vector<8x2xf32> to vector<8x1xf32>
    %9 = vector.extract_strided_slice %2 {offsets = [1, 0], sizes = [1, 128], strides = [1, 1]} : vector<2x128xf32> to vector<1x128xf32>
    %10 = vector.broadcast %8 : vector<8x1xf32> to vector<8x128xf32>
    %11 = vector.broadcast %9 : vector<1x128xf32> to vector<8x128xf32>
    %12 = arith.mulf %10, %11 : vector<8x128xf32>
    %13 = arith.addf %7, %12 : vector<8x128xf32>
    %14 = vector.broadcast %1 : vector<1x128xf32> to vector<8x128xf32>
    %15 = arith.addf %13, %14 : vector<8x128xf32>
    %cst = arith.constant dense<0xFF800000> : vector<8xf32>
    %16 = vector.multi_reduction <maximumf>, %15, %cst [1] : vector<8x128xf32> to vector<8xf32>
    %17 = vector.shape_cast %16 : vector<8xf32> to vector<8x1xf32>
    %18 = vector.broadcast %17 : vector<8x1xf32> to vector<8x128xf32>
    %19 = arith.subf %15, %18 : vector<8x128xf32>
    %20 = math.exp %19 : vector<8x128xf32>
    %cst_5 = arith.constant dense<0.000000e+00> : vector<8xf32>
    %21 = vector.multi_reduction <add>, %20, %cst_5 [1] : vector<8x128xf32> to vector<8xf32>
    %22 = vector.shape_cast %21 : vector<8xf32> to vector<8x1xf32>
    %23 = tpu.reciprocal %22 : vector<8x1xf32> -> vector<8x1xf32>
    %24 = vector.broadcast %23 : vector<8x1xf32> to vector<8x128xf32>
    %25 = arith.mulf %20, %24 : vector<8x128xf32>
    %c0_6 = arith.constant 0 : index
    %c0_7 = arith.constant 0 : index
    %26 = vector.load %arg4[%c0_6, %c0_7] : memref<8x128xf32, #tpu.memory_space<vmem>>, vector<8x128xf32>
    tpu.vector_store %arg4[%c0_6, %c0_7], %25 {strides = array<i32>} : memref<8x128xf32, #tpu.memory_space<vmem>>, vector<8x128xf32>,
    return
  }
  func.func @transform_0(%arg0: i32) -> (i32, i32) {
    %c0_i32 = arith.constant 0 : i32
    %c0_i32_0 = arith.constant 0 : i32
    return %arg0, %c0_i32 : i32, i32
  }
  func.func @transform_1(%arg0: i32) -> (i32, i32) {
    %c0_i32 = arith.constant 0 : i32
    %c0_i32_0 = arith.constant 0 : i32
    %c0_i32_1 = arith.constant 0 : i32
    return %c0_i32, %c0_i32_0 : i32, i32
  }
  func.func @transform_2(%arg0: i32) -> (i32, i32) {
    %c0_i32 = arith.constant 0 : i32
    %c0_i32_0 = arith.constant 0 : i32
    %c0_i32_1 = arith.constant 0 : i32
    return %c0_i32, %c0_i32_0 : i32, i32
  }
  func.func @transform_3(%arg0: i32) -> (i32, i32) {
    %c0_i32 = arith.constant 0 : i32
    %c0_i32_0 = arith.constant 0 : i32
    return %arg0, %c0_i32 : i32, i32
  }
}

</mosaic_0001>

<bundles_post_ra>
// kernel: tpu_custom_call.1
= control target key start
LH: loop header
LB: loop body
LE: loop exit
PB: predicated region body
PF: predicated region fallthrough
CT: control target
= control target key end

     0   :  { %v103_v1 = vmov 0   ;;  %s147_s0 = inlined_call_operand.vmem [shape: f32[8,2], index: 0, kind: input, shape index: {}]   ;;  %s148_s1 = inlined_call_operand.vmem [shape: f32[2,128], index: 1, kind: input, shape index: {}]   ;;  %s149_s2 = inlined_call_operand.vmem [shape: f32[1,128], index: 2, kind: input, shape index: {}]   ;;  %s150_s3 = inlined_call_operand.hbm [shape: f32[8,128], index: 3, kind: output, shape index: {}]  }
   0x1   :  { %v15_v0 = vld [vmem:[%s147_s0] sm:$0xff]  ;;  %73 = vset.pattern.permute.xlu0 %v103_v1 }
   0x2   :  { %8 = vsyncpa [#allocation3], 0  ;;  %20 = vperm.xlu0 %73, %v15_v0   ;;  %v104_v2 = vmov 1   ;;  %v23_v3 = vlaneseq  ;;  %v17_v7 = vld [vmem:[%s148_s1] sm:$0x3]  ;;  %s105_s1 = smov [#allocation2]  }
   0x3   :  { %v69_v14 = vld [vmem:[%s149_s2] ss:$0 sm:$0xff]  ;;  %s61_s17 = sshll.u32 %s105_s1, 4  ;;  %s62_s17 = int_to_ptr.vmem [resolvable:$true] %s61_s17 }
   0x4   :  { %v24_v4 = vshrl.u32 %v23_v3, 7  ;;  %s79_s18 = scalar_lea.vmem %s62_s17, 128  ;;  %p84_p1 = scmp.lt.s32.totalorder %s62_s17, %s62_s17 }
   0x5   :  { %p80_p0 = scmp.ne.s32.totalorder %s62_s17, %s79_s18  ;;  %p85_p2 = scmp.lt.s32.totalorder %s79_s18, %s79_s18 }
   0x6   :  { %74 = vset.pattern.permute.xlu0 %v104_v2  ;;  %v25_v5 = vsub.s32 0, %v24_v4  ;;  %v34_v6 = vsub.s32 1, %v24_v4 }
   0x7   :  { %29 = vperm.xlu0 %74, %v15_v0   ;;  %p86_p3 = por %p85_p2, %p84_p1 }
   0x8   :  { %v26_v9 = vrot.slane %v17_v7, %v25_v5  ;;  %v35_v10 = vrot.slane %v17_v7, %v34_v6 }
   0x9   :  { %p87_p4 = pnand %p86_p3, %p80_p0 }
  0x81   :  { %v21_v8 = vpop.permute.xlu0 %20 }
  0x82   :  { %v27_v12 = vmul.f32 %v26_v9, %v21_v8 }
  0x86   :  { %v30_v11 = vpop.permute.xlu0 %29 }
  0x87   :  { %v36_v13 = vmul.f32 %v35_v10, %v30_v11 }
  0x89   :  { %v37_v15 = vadd.f32 %v36_v13, %v27_v12 }
  0x8b   :  { %v44_v16 = vadd.f32 %v69_v14, %v37_v15 }
  0x8d   :  { %45 = vmax.xlane.f32.xlu1 %v44_v16 }
 0x11a   :  { %v46_v17 = vpop.xlane.xlu1 %45 }
 0x11b   :  { %v47_v18 = vsub.f32 %v44_v16, %v46_v17 }
 0x11d   :  { %v48_v19 = vmul.f32 1.442695, %v47_v18 }
 0x11f   :  { %75 = vpow2.f32 %v48_v19 }
 0x129   :  { %v76_v20 = vpop.eup %75 }
 0x12a   :  { %50 = vadd.xlane.f32.xlu1 %v76_v20 }
 0x1b7   :  { %v51_v21 = vpop.xlane.xlu1 %50 }
 0x1b8   :  { %77 = vrcp.f32 %v51_v21 }
 0x1c2   :  { %v78_v22 = vpop.eup %77 }
 0x1c3   :  { %v53_v23 = vmul.f32 %v78_v22, %v76_v20 }
 0x1c5   :  { %54 = vst [vmem:[#allocation2] sm:$0xff] %v53_v23 }
 0x1c6   :  { %90 = shalt.err (!%p87_p4)
}
 0x1c7   :  { %s91_s20 = scalar_lea.hbm %s150_s3, 128 }
 0x1c8   :  { %p92_p5 = scmp.ne.s32.totalorder %s150_s3, %s91_s20  ;;  %p95_p6 = scmp.lt.u32.totalorder %s91_s20, %s150_s3 }
 0x1ca   :  { %p97_p7 = pnand %p95_p6, %p92_p5 }
 0x1cc   :  { %100 = shalt.err (!%p97_p7)
}
 0x1cd   :  { %64 = dma.vmem_to_hbm [thread:$0]  %s62_s17, 128, %s150_s3, [#allocation3]  }
 0x1ce   :  { %101 = dma.done.wait [#allocation3], 128  }
 0x1cf   :  { %102 = vsyncadd [#allocation3], 4294967168 }
 0x1d0   :  { %68 = vsyncpa [#allocation3], 1 }

</bundles_post_ra>
